<compile_context>
chip_gen: v7x
topology: tpu7x:2x2x1
jax: 0.10.0
libtpu: 0.0.40
codegen_flags: <defaults>
</compile_context>

<pallas_src>
import functools

import jax
import jax.numpy as jnp
from jax.experimental import pallas as pl
from jax.experimental.pallas import tpu as pltpu


_DH_SLAB = 512                      # fc1 epilogue slab width (multiple of 128)


def _round_up(x, m):
    return (x + m - 1) // m * m


def _cdiv(a, b):
    return (a + b - 1) // b


# -----------------------------------------------------------------------------
# Kernel
# -----------------------------------------------------------------------------
def _fc_baseline_kernel(x_ref, w1_ref, b1_ref, w2_ref, b2_ref, o_ref, h_ref,
                        *, dh_slab):
    """Grid: (batch tile i, output-column tile j).  The fc1 activation of the
    current batch tile is computed once per i (at j == 0) into a VMEM scratch
    and reused for every output-column tile j."""
    j = pl.program_id(1)
    d_h = h_ref.shape[1]

    @pl.when(j == 0)
    def _():
        x = x_ref[...].astype(h_ref.dtype)                    # in-kernel cast
        # Chunked fc1 epilogue: keep the live f32 temp to tb x dh_slab.
        for s in range(0, d_h, dh_slab):
            w = min(dh_slab, d_h - s)
            hs = jnp.dot(x, w1_ref[:, s:s + w],
                         preferred_element_type=jnp.float32)
            hs = jnp.maximum(hs + b1_ref[:, s:s + w], 0.0)    # bias+ReLU (f32)
            h_ref[:, s:s + w] = hs.astype(h_ref.dtype)

    y = jnp.dot(h_ref[...], w2_ref[...], preferred_element_type=jnp.float32)
    o_ref[...] = (y + b2_ref[...]).astype(o_ref.dtype)


# -----------------------------------------------------------------------------
# VMEM budgeting / tile selection
# -----------------------------------------------------------------------------
def _vmem_limits():
    """(vmem_limit_bytes for the compiler, working-set budget for the tile
    search) -- both derived from the same generation-aware capacity query."""
    try:
        cap = getattr(pltpu.get_tpu_info(), "vmem_capacity_bytes", None)
    except Exception:
        cap = None
    if not cap:
        cap = 64 * 1024 * 1024          # conservative fallback (v7x per-core)
    limit = int(cap * 0.85)             # headroom for compiler-internal scratch
    budget = max(int(limit * 0.75), limit - 8 * 1024 * 1024)
    return limit, budget


def _tile_bytes(rows, cols, itemsize):
    # rough padded VMEM footprint of a (rows, cols) buffer
    return _round_up(max(rows, 1), 8) * _round_up(max(cols, 1), 128) * itemsize


def _working_set(tb, tn, d_in, d_h, x_bytes, c_bytes, o_bytes, w_bufs, dh_slab):
    ws = 0
    ws += 2 * _tile_bytes(tb, d_in, x_bytes)          # x tile (double-buffered)
    ws += w_bufs * _tile_bytes(d_in, d_h, c_bytes)    # resident W1
    ws += w_bufs * _tile_bytes(1, d_h, 4)             # resident b1 (f32)
    ws += 2 * _tile_bytes(d_h, tn, c_bytes)           # W2 column tile
    ws += 2 * _tile_bytes(1, tn, 4)                   # b2 column tile (f32)
    ws += 2 * _tile_bytes(tb, tn, o_bytes)            # output tile
    ws += _tile_bytes(tb, d_h, c_bytes)               # h scratch (compute dt)
    ws += _tile_bytes(tb, min(d_h, dh_slab), 4)       # f32 fc1 slab temp
    ws += _tile_bytes(tb, tn, 4)                      # f32 fc2 accum temp
    ws += _tile_bytes(tb, d_in, c_bytes)              # casted x temp
    return ws


def _choose_tiles(B, d_in, d_h, d_out_total, x_bytes, c_bytes, o_bytes,
                  budget, w_bufs, dh_slab):
    row = 16 if c_bytes == 2 else 8                   # bf16 sublane packing

    def fits(tb, tn):
        return _working_set(tb, tn, d_in, d_h, x_bytes, c_bytes, o_bytes,
                            w_bufs, dh_slab) <= budget

    # Preferred batch tile: 256-512 rows (amortize ~0.35us/step overhead)
    # while still giving >= 2 grid steps when B allows.
    if B <= 2 * row:
        tb_pref = B
    else:
        tb_pref = min(512, _round_up(max(row, B // 2), row))

    # Output-column tile: full width if it fits with a reasonable batch tile,
    # else 128-multiples (lane-dense stores) with h reused across j.
    tb_probe = min(tb_pref, max(row, min(256, _round_up(B, row))))
    tn_cands = [d_out_total]
    k = _round_up(d_out_total, 128) // 128 // 2
    while k >= 1:
        tn_cands.append(k * 128)
        k //= 2
    tn = tn_cands[-1]
    for cand in tn_cands:
        if fits(tb_probe, cand):
            tn = cand
            break

    # Largest batch tile (multiple of `row`) within the budget.
    tb = tb_pref
    while tb > row and not fits(tb, tn):
        tb = max(row, _round_up(tb // 2, row))

    # Prefer an even number of batch steps: the "parallel" axis is sharded
    # across v7x's 2 TensorCores.
    steps = _cdiv(B, tb)
    if steps > 1 and steps % 2 == 1:
        tb_even = _round_up(_cdiv(B, steps + 1), row)
        if row <= tb_even <= tb and _cdiv(B, tb_even) % 2 == 0:
            tb = tb_even
    return tb, tn


# -----------------------------------------------------------------------------
# Wrapper
# -----------------------------------------------------------------------------
def prepare_params(w1, b1, w2, b2, compute_dtype=jnp.bfloat16):
    """Cast/reshape the static Linear parameters ONCE (hoisted out of the
    per-call path).  Weights are (in, out) == transpose of PyTorch's (out, in)."""
    return (jnp.asarray(w1).astype(compute_dtype),
            jnp.asarray(b1, jnp.float32).reshape(1, -1),
            jnp.asarray(w2).astype(compute_dtype),
            jnp.asarray(b2, jnp.float32).reshape(1, -1))


def fc_baseline_forward(params, n_embeds, local_feat, global_feat=None,
                        pad_mask=None, *, tb=None, tn=None,
                        single_buffer_weights=True, dh_slab=_DH_SLAB):
    """FCbaseline.forward: local_feat (B, d_in) -> (B, n_embeds, d_out).
    global_feat / pad_mask are accepted and ignored (matches the module)."""
    del global_feat, pad_mask
    w1, b1, w2, b2 = params
    B, d_in = local_feat.shape
    d_h = w1.shape[1]
    d_out_total = w2.shape[1]
    assert d_out_total % n_embeds == 0
    d_out = d_out_total // n_embeds

    compute_dtype = w1.dtype
    out_dtype = local_feat.dtype
    x_bytes = jnp.dtype(local_feat.dtype).itemsize
    c_bytes = jnp.dtype(compute_dtype).itemsize
    o_bytes = jnp.dtype(out_dtype).itemsize

    vmem_limit, vmem_budget = _vmem_limits()
    w_bufs = 1 if single_buffer_weights else 2
    auto_tb, auto_tn = _choose_tiles(B, d_in, d_h, d_out_total, x_bytes,
                                     c_bytes, o_bytes, vmem_budget, w_bufs,
                                     dh_slab)
    tb = auto_tb if tb is None else tb
    tn = auto_tn if tn is None else tn
    assert tb == B or tb % 8 == 0
    assert tn == d_out_total or tn % 128 == 0

    n_bi = _cdiv(B, tb)
    n_bj = _cdiv(d_out_total, tn)

    flops = 2 * B * d_h * (d_in + d_out_total)
    w2_reads = 1 if n_bj == 1 else n_bi
    bytes_accessed = (B * d_in * x_bytes + w1.size * c_bytes + b1.size * 4
                      + w2_reads * (w2.size * c_bytes + b2.size * 4)
                      + B * d_out_total * o_bytes)

    kernel = functools.partial(_fc_baseline_kernel, dh_slab=dh_slab)

    def _call(use_buffered_weights):
        def resident(shape):
            # W1/b1 never change across the grid; single-buffer them to halve
            # their VMEM footprint (matters most on v7x's 64 MiB VMEM).
            if use_buffered_weights:
                return pl.BlockSpec(shape, lambda i, j: (0, 0),
                                    pipeline_mode=pl.Buffered(1))
            return pl.BlockSpec(shape, lambda i, j: (0, 0))

        return pl.pallas_call(
            kernel,
            out_shape=jax.ShapeDtypeStruct((B, d_out_total), out_dtype),
            grid_spec=pltpu.PrefetchScalarGridSpec(
                num_scalar_prefetch=0,
                grid=(n_bi, n_bj),
                in_specs=[
                    pl.BlockSpec((tb, d_in), lambda i, j: (i, 0)),  # x tile
                    resident((d_in, d_h)),                          # W1
                    resident((1, d_h)),                             # b1
                    pl.BlockSpec((d_h, tn), lambda i, j: (0, j)),   # W2 cols
                    pl.BlockSpec((1, tn), lambda i, j: (0, j)),     # b2 cols
                ],
                out_specs=pl.BlockSpec((tb, tn), lambda i, j: (i, j)),
                scratch_shapes=[pltpu.VMEM((tb, d_h), compute_dtype)],
            ),
            compiler_params=pltpu.CompilerParams(
                dimension_semantics=("parallel", "arbitrary"),
                vmem_limit_bytes=vmem_limit),
            cost_estimate=pl.CostEstimate(flops=flops, transcendentals=0,
                                          bytes_accessed=bytes_accessed),
        )(local_feat, w1, b1, w2, b2)

    if single_buffer_weights:
        try:
            out_flat = _call(True)
        except Exception:
            # pl.Buffered / pipeline_mode not supported on this jax build.
            out_flat = _call(False)
    else:
        out_flat = _call(False)

    # einops 'b (n d) -> b n d' with n = n_embeds: pure metadata reshape.
    return out_flat.reshape(B, n_embeds, d_out)


# -----------------------------------------------------------------------------
# Init + pure-JAX reference
# -----------------------------------------------------------------------------
def init_params(key, n_embeds, d_in, d_out, d_h, dtype=jnp.float32):
    """nn.Linear-style uniform(-1/sqrt(fan_in), 1/sqrt(fan_in)) init."""
    k1, k2, k3, k4 = jax.random.split(key, 4)
    l1 = 1.0 / (d_in ** 0.5)
    l2 = 1.0 / (d_h ** 0.5)
    w1 = jax.random.uniform(k1, (d_in, d_h), dtype, -l1, l1)
    b1 = jax.random.uniform(k2, (d_h,), dtype, -l1, l1)
    w2 = jax.random.uniform(k3, (d_h, d_out * n_embeds), dtype, -l2, l2)
    b2 = jax.random.uniform(k4, (d_out * n_embeds,), dtype, -l2, l2)
    return w1, b1, w2, b2


def _reference(local_feat, params, n_embeds):
    """Pure-JAX reference following the same dtype path as the kernel."""
    w1, b1, w2, b2 = params
    c = w1.dtype
    x = local_feat.astype(c)
    h = jnp.dot(x, w1, preferred_element_type=jnp.float32) + b1
    h = jnp.maximum(h, 0.0).astype(c)
    y = jnp.dot(h, w2, preferred_element_type=jnp.float32) + b2
    B = local_feat.shape[0]
    return y.astype(local_feat.dtype).reshape(B, n_embeds, -1)


if __name__ == "__main__":
    # Small shapes consistent with FCbaseline.forward.
    n_embeds, d_in, d_out, d_h = 4, 32, 16, 64
    B = 64   # multi-step batch grid (pipelining / even 2-TC sharding)

    key = jax.random.PRNGKey(0)
    k_x, k_g, k_p = jax.random.split(key, 3)
    local_feat = jax.random.normal(k_x, (B, d_in), jnp.float32)
    global_feat = jax.random.normal(k_g, (B, d_in), jnp.float32)  # ignored
    raw = init_params(k_p, n_embeds, d_in, d_out, d_h)

    # Primary (performance) path: bf16 MXU operands, weights prepared once.
    params_bf16 = prepare_params(*raw, compute_dtype=jnp.bfloat16)
    out = jax.block_until_ready(
        fc_baseline_forward(params_bf16, n_embeds, local_feat, global_feat))
    ref = _reference(local_feat, params_bf16, n_embeds)
    assert out.shape == (B, n_embeds, d_out)
    assert jnp.allclose(out, ref, atol=2e-2, rtol=2e-2)

    # Tight-accuracy path: all-f32 operands vs. the f32 reference.
    params_f32 = prepare_params(*raw, compute_dtype=jnp.float32)
    out32 = jax.block_until_ready(
        fc_baseline_forward(params_f32, n_embeds, local_feat))
    ref32 = _reference(local_feat, params_f32, n_embeds)
    assert out32.shape == (B, n_embeds, d_out)
    assert jnp.allclose(out32, ref32, atol=1e-5, rtol=1e-5)

    # Exercise the ragged-batch (partial last tile) and W2 column-tiled
    # (multi-j with h-scratch reuse) code paths at small shapes.
    B2, n2, d_in2, d_out2, d_h2 = 40, 2, 48, 128, 256
    kx2, kp2 = jax.random.split(jax.random.PRNGKey(1))
    x2 = jax.random.normal(kx2, (B2, d_in2), jnp.float32)
    params2 = prepare_params(*init_params(kp2, n2, d_in2, d_out2, d_h2),
                             compute_dtype=jnp.bfloat16)
    out2 = jax.block_until_ready(
        fc_baseline_forward(params2, n2, x2, tb=16, tn=128))
    ref2 = _reference(x2, params2, n2)
    assert out2.shape == (B2, n2, d_out2)
    assert jnp.allclose(out2, ref2, atol=2e-2, rtol=2e-2)

    print("KERNEL_OK")
</pallas_src>

<mosaic_0001>
module attributes {stable_mosaic.version = 11 : i64} {
  func.func @_fc_baseline_kernel(%arg0: i32, %arg1: i32, %arg2: memref<32x32xf32, #tpu.memory_space<vmem>>, %arg3: memref<32x64xbf16, #tpu.memory_space<vmem>>, %arg4: memref<1x64xf32, #tpu.memory_space<vmem>>, %arg5: memref<64x64xbf16, #tpu.memory_space<vmem>>, %arg6: memref<1x64xf32, #tpu.memory_space<vmem>>, %arg7: memref<32x64xf32, #tpu.memory_space<vmem>>, %arg8: memref<32x64xbf16, #tpu.memory_space<vmem>>) attributes {dimension_semantics = [#tpu.dimension_semantics<parallel>, #tpu.dimension_semantics<arbitrary>], iteration_bounds = array<i64: 2, 1>, scalar_prefetch = 0 : i64, scratch_operands = 1 : i64, tpu.core_type = #tpu.core_type<tc>, window_params = [{transform_indices = @transform_0, window_bounds = array<i64: 32, 32>}, {pipeline_mode = #tpu.pipeline_mode<synchronous>, transform_indices = @transform_1, window_bounds = array<i64: 32, 64>}, {pipeline_mode = #tpu.pipeline_mode<synchronous>, transform_indices = @transform_2, window_bounds = array<i64: 1, 64>}, {transform_indices = @transform_3, window_bounds = array<i64: 64, 64>}, {transform_indices = @transform_4, window_bounds = array<i64: 1, 64>}, {transform_indices = @transform_5, window_bounds = array<i64: 32, 64>}]} {
    %c0_i32 = arith.constant 0 : i32
    %0 = arith.cmpi eq, %arg1, %c0_i32 : i32
    %1 = arith.extui %0 : i1 to i32
    %c0_i32_0 = arith.constant 0 : i32
    %2 = arith.cmpi ne, %1, %c0_i32_0 : i32
    scf.if %2 {
      %c0_8 = arith.constant 0 : index
      %c0_9 = arith.constant 0 : index
      %10 = vector.load %arg2[%c0_8, %c0_9] : memref<32x32xf32, #tpu.memory_space<vmem>>, vector<32x32xf32>
      %11 = arith.truncf %10 : vector<32x32xf32> to vector<32x32xbf16>
      %c0_10 = arith.constant 0 : index
      %c0_11 = arith.constant 0 : index
      %12 = vector.load %arg3[%c0_10, %c0_11] : memref<32x64xbf16, #tpu.memory_space<vmem>>, vector<32x64xbf16>
      %cst_12 = arith.constant dense<0.000000e+00> : vector<32x64xf32>
      %13 = tpu.matmul %11, %12, %cst_12 {dimension_numbers = #tpu.dot_dimension_numbers<[1], [0], [0], [1], [0, 0, 1, 1], [], []>} : vector<32x32xbf16>, vector<32x64xbf16>, vector<32x64xf32> -> vector<32x64xf32>
      %c0_13 = arith.constant 0 : index
      %c0_14 = arith.constant 0 : index
      %14 = vector.load %arg4[%c0_13, %c0_14] : memref<1x64xf32, #tpu.memory_space<vmem>>, vector<1x64xf32>
      %15 = vector.broadcast %14 : vector<1x64xf32> to vector<32x64xf32>
      %16 = arith.addf %13, %15 : vector<32x64xf32>
      %cst_15 = arith.constant 0.000000e+00 : f32
      %17 = vector.broadcast %cst_15 : f32 to vector<32x64xf32>
      %18 = arith.maximumf %16, %17 : vector<32x64xf32>
      %19 = arith.truncf %18 : vector<32x64xf32> to vector<32x64xbf16>
      %c0_16 = arith.constant 0 : index
      %c0_17 = arith.constant 0 : index
      %20 = vector.load %arg8[%c0_16, %c0_17] : memref<32x64xbf16, #tpu.memory_space<vmem>>, vector<32x64xbf16>
      tpu.vector_store %arg8[%c0_16, %c0_17], %19 {strides = array<i32>} : memref<32x64xbf16, #tpu.memory_space<vmem>>, vector<32x64xbf16>,
    } else {
    }
    %c0 = arith.constant 0 : index
    %c0_1 = arith.constant 0 : index
    %3 = vector.load %arg8[%c0, %c0_1] : memref<32x64xbf16, #tpu.memory_space<vmem>>, vector<32x64xbf16>
    %c0_2 = arith.constant 0 : index
    %c0_3 = arith.constant 0 : index
    %4 = vector.load %arg5[%c0_2, %c0_3] : memref<64x64xbf16, #tpu.memory_space<vmem>>, vector<64x64xbf16>
    %cst = arith.constant dense<0.000000e+00> : vector<32x64xf32>
    %5 = tpu.matmul %3, %4, %cst {dimension_numbers = #tpu.dot_dimension_numbers<[1], [0], [0], [1], [0, 0, 1, 1], [], []>} : vector<32x64xbf16>, vector<64x64xbf16>, vector<32x64xf32> -> vector<32x64xf32>
    %c0_4 = arith.constant 0 : index
    %c0_5 = arith.constant 0 : index
    %6 = vector.load %arg6[%c0_4, %c0_5] : memref<1x64xf32, #tpu.memory_space<vmem>>, vector<1x64xf32>
    %7 = vector.broadcast %6 : vector<1x64xf32> to vector<32x64xf32>
    %8 = arith.addf %5, %7 : vector<32x64xf32>
    %c0_6 = arith.constant 0 : index
    %c0_7 = arith.constant 0 : index
    %9 = vector.load %arg7[%c0_6, %c0_7] : memref<32x64xf32, #tpu.memory_space<vmem>>, vector<32x64xf32>
    tpu.vector_store %arg7[%c0_6, %c0_7], %8 {strides = array<i32>} : memref<32x64xf32, #tpu.memory_space<vmem>>, vector<32x64xf32>,
    return
  }
  func.func @transform_0(%arg0: i32, %arg1: i32) -> (i32, i32) {
    %c0_i32 = arith.constant 0 : i32
    %c0_i32_0 = arith.constant 0 : i32
    return %arg0, %c0_i32 : i32, i32
  }
  func.func @transform_1(%arg0: i32, %arg1: i32) -> (i32, i32) {
    %c0_i32 = arith.constant 0 : i32
    %c0_i32_0 = arith.constant 0 : i32
    %c0_i32_1 = arith.constant 0 : i32
    return %c0_i32, %c0_i32_0 : i32, i32
  }
  func.func @transform_2(%arg0: i32, %arg1: i32) -> (i32, i32) {
    %c0_i32 = arith.constant 0 : i32
    %c0_i32_0 = arith.constant 0 : i32
    %c0_i32_1 = arith.constant 0 : i32
    return %c0_i32, %c0_i32_0 : i32, i32
  }
  func.func @transform_3(%arg0: i32, %arg1: i32) -> (i32, i32) {
    %c0_i32 = arith.constant 0 : i32
    %c0_i32_0 = arith.constant 0 : i32
    return %c0_i32, %arg1 : i32, i32
  }
  func.func @transform_4(%arg0: i32, %arg1: i32) -> (i32, i32) {
    %c0_i32 = arith.constant 0 : i32
    %c0_i32_0 = arith.constant 0 : i32
    return %c0_i32, %arg1 : i32, i32
  }
  func.func @transform_5(%arg0: i32, %arg1: i32) -> (i32, i32) {
    %c0_i32 = arith.constant 0 : i32
    return %arg0, %arg1 : i32, i32
  }
}

module attributes {stable_mosaic.version = 11 : i64} {
  func.func @_fc_baseline_kernel(%arg0: i32, %arg1: i32, %arg2: memref<32x32xf32, #tpu.memory_space<vmem>>, %arg3: memref<32x64xbf16, #tpu.memory_space<vmem>>, %arg4: memref<1x64xf32, #tpu.memory_space<vmem>>, %arg5: memref<64x64xbf16, #tpu.memory_space<vmem>>, %arg6: memref<1x64xf32, #tpu.memory_space<vmem>>, %arg7: memref<32x64xf32, #tpu.memory_space<vmem>>, %arg8: memref<32x64xbf16, #tpu.memory_space<vmem>>) attributes {dimension_semantics = [#tpu.dimension_semantics<parallel>, #tpu.dimension_semantics<arbitrary>], iteration_bounds = array<i64: 2, 1>, scalar_prefetch = 0 : i64, scratch_operands = 1 : i64, tpu.core_type = #tpu.core_type<tc>, window_params = [{transform_indices = @transform_0, window_bounds = array<i64: 32, 32>}, {pipeline_mode = #tpu.pipeline_mode<synchronous>, transform_indices = @transform_1, window_bounds = array<i64: 32, 64>}, {pipeline_mode = #tpu.pipeline_mode<synchronous>, transform_indices = @transform_2, window_bounds = array<i64: 1, 64>}, {transform_indices = @transform_3, window_bounds = array<i64: 64, 64>}, {transform_indices = @transform_4, window_bounds = array<i64: 1, 64>}, {transform_indices = @transform_5, window_bounds = array<i64: 32, 64>}]} {
    %c0_i32 = arith.constant 0 : i32
    %0 = arith.cmpi eq, %arg1, %c0_i32 : i32
    %1 = arith.extui %0 : i1 to i32
    %c0_i32_0 = arith.constant 0 : i32
    %2 = arith.cmpi ne, %1, %c0_i32_0 : i32
    scf.if %2 {
      %c0_8 = arith.constant 0 : index
      %c0_9 = arith.constant 0 : index
      %10 = vector.load %arg2[%c0_8, %c0_9] : memref<32x32xf32, #tpu.memory_space<vmem>>, vector<32x32xf32>
      %11 = arith.truncf %10 : vector<32x32xf32> to vector<32x32xbf16>
      %c0_10 = arith.constant 0 : index
      %c0_11 = arith.constant 0 : index
      %12 = vector.load %arg3[%c0_10, %c0_11] : memref<32x64xbf16, #tpu.memory_space<vmem>>, vector<32x64xbf16>
      %cst_12 = arith.constant dense<0.000000e+00> : vector<32x64xf32>
      %13 = tpu.matmul %11, %12, %cst_12 {dimension_numbers = #tpu.dot_dimension_numbers<[1], [0], [0], [1], [0, 0, 1, 1], [], []>} : vector<32x32xbf16>, vector<32x64xbf16>, vector<32x64xf32> -> vector<32x64xf32>
      %c0_13 = arith.constant 0 : index
      %c0_14 = arith.constant 0 : index
      %14 = vector.load %arg4[%c0_13, %c0_14] : memref<1x64xf32, #tpu.memory_space<vmem>>, vector<1x64xf32>
      %15 = vector.broadcast %14 : vector<1x64xf32> to vector<32x64xf32>
      %16 = arith.addf %13, %15 : vector<32x64xf32>
      %cst_15 = arith.constant 0.000000e+00 : f32
      %17 = vector.broadcast %cst_15 : f32 to vector<32x64xf32>
      %18 = arith.maximumf %16, %17 : vector<32x64xf32>
      %19 = arith.truncf %18 : vector<32x64xf32> to vector<32x64xbf16>
      %c0_16 = arith.constant 0 : index
      %c0_17 = arith.constant 0 : index
      %20 = vector.load %arg8[%c0_16, %c0_17] : memref<32x64xbf16, #tpu.memory_space<vmem>>, vector<32x64xbf16>
      tpu.vector_store %arg8[%c0_16, %c0_17], %19 {strides = array<i32>} : memref<32x64xbf16, #tpu.memory_space<vmem>>, vector<32x64xbf16>,
    } else {
    }
    %c0 = arith.constant 0 : index
    %c0_1 = arith.constant 0 : index
    %3 = vector.load %arg8[%c0, %c0_1] : memref<32x64xbf16, #tpu.memory_space<vmem>>, vector<32x64xbf16>
    %c0_2 = arith.constant 0 : index
    %c0_3 = arith.constant 0 : index
    %4 = vector.load %arg5[%c0_2, %c0_3] : memref<64x64xbf16, #tpu.memory_space<vmem>>, vector<64x64xbf16>
    %cst = arith.constant dense<0.000000e+00> : vector<32x64xf32>
    %5 = tpu.matmul %3, %4, %cst {dimension_numbers = #tpu.dot_dimension_numbers<[1], [0], [0], [1], [0, 0, 1, 1], [], []>} : vector<32x64xbf16>, vector<64x64xbf16>, vector<32x64xf32> -> vector<32x64xf32>
    %c0_4 = arith.constant 0 : index
    %c0_5 = arith.constant 0 : index
    %6 = vector.load %arg6[%c0_4, %c0_5] : memref<1x64xf32, #tpu.memory_space<vmem>>, vector<1x64xf32>
    %7 = vector.broadcast %6 : vector<1x64xf32> to vector<32x64xf32>
    %8 = arith.addf %5, %7 : vector<32x64xf32>
    %c0_6 = arith.constant 0 : index
    %c0_7 = arith.constant 0 : index
    %9 = vector.load %arg7[%c0_6, %c0_7] : memref<32x64xf32, #tpu.memory_space<vmem>>, vector<32x64xf32>
    tpu.vector_store %arg7[%c0_6, %c0_7], %8 {strides = array<i32>} : memref<32x64xf32, #tpu.memory_space<vmem>>, vector<32x64xf32>,
    return
  }
  func.func @transform_0(%arg0: i32, %arg1: i32) -> (i32, i32) {
    %c0_i32 = arith.constant 0 : i32
    %c0_i32_0 = arith.constant 0 : i32
    return %arg0, %c0_i32 : i32, i32
  }
  func.func @transform_1(%arg0: i32, %arg1: i32) -> (i32, i32) {
    %c0_i32 = arith.constant 0 : i32
    %c0_i32_0 = arith.constant 0 : i32
    %c0_i32_1 = arith.constant 0 : i32
    return %c0_i32, %c0_i32_0 : i32, i32
  }
  func.func @transform_2(%arg0: i32, %arg1: i32) -> (i32, i32) {
    %c0_i32 = arith.constant 0 : i32
    %c0_i32_0 = arith.constant 0 : i32
    %c0_i32_1 = arith.constant 0 : i32
    return %c0_i32, %c0_i32_0 : i32, i32
  }
  func.func @transform_3(%arg0: i32, %arg1: i32) -> (i32, i32) {
    %c0_i32 = arith.constant 0 : i32
    %c0_i32_0 = arith.constant 0 : i32
    return %c0_i32, %arg1 : i32, i32
  }
  func.func @transform_4(%arg0: i32, %arg1: i32) -> (i32, i32) {
    %c0_i32 = arith.constant 0 : i32
    %c0_i32_0 = arith.constant 0 : i32
    return %c0_i32, %arg1 : i32, i32
  }
  func.func @transform_5(%arg0: i32, %arg1: i32) -> (i32, i32) {
    %c0_i32 = arith.constant 0 : i32
    return %arg0, %arg1 : i32, i32
  }
}

</mosaic_0001>

<bundles_post_ra>
// kernel: tpu_custom_call.1
= control target key start
LH: loop header
LB: loop body
LE: loop exit
PB: predicated region body
PF: predicated region fallthrough
CT: control target
= control target key end

     0   :  { %10 = vsyncpa [#allocation4], 0  ;;  %s965_s0 = inlined_call_operand.vmem [shape: f32[64,32], index: 0, kind: input, shape index: {}]   ;;  %s966_s1 = inlined_call_operand.vmem [shape: bf16[32,64], index: 1, kind: input, shape index: {}]   ;;  %s967_s2 = inlined_call_operand.vmem [shape: f32[1,64], index: 2, kind: input, shape index: {}]   ;;  %s968_s3 = inlined_call_operand.vmem [shape: bf16[64,64], index: 3, kind: input, shape index: {}]   ;;  %s969_s4 = inlined_call_operand.vmem [shape: f32[1,64], index: 4, kind: input, shape index: {}]   ;;  %s970_s5 = inlined_call_operand.hbm [shape: f32[64,64], index: 5, kind: output, shape index: {}]  }
   0x1   :  { %12 = vsyncpa [#allocation4 + $0x1], 0  ;;  %s819_s18 = smov 0   ;;  %s821_s19 = smov 0  }
   0x2   :  { %s823_s20 = smov 0   ;;  %s825_s21 = smov 0  }
   0x3   :  { %s827_s22 = smov 0   ;;  %s829_s23 = smov 0  }
   0x4 LB: > { %s585_s24 = sadd.s32 4294967295, %s784_s23   ;;  %s586_s25 = sadd.s32 4294967294, %s784_s23   ;;  %s784_s23 = sphi %s829_s23, %s18_s23   ;;  %s780_s22 = sphi %s827_s22, %s977_s22   ;;  %s776_s21 = sphi %s825_s21, %s976_s21   ;;  %s772_s20 = sphi %s823_s20, %s975_s20   ;;  %s768_s19 = sphi %s821_s19, %s974_s19   ;;  %s764_s18 = sphi %s819_s18, %s973_s18  }
   0x5   : > { %s30_s26 = sadd.s32 1, %s780_s22  ;;  %s159_s27 = sadd.s32 1, %s772_s20 }
   0x6   : > { %p32_p0 = scmp.ge.s32.totalorder %s30_s26, 2  ;;  %p169_p1 = scmp.ne.s32.totalorder %s772_s20, %s768_s19 }
   0x7   : > { %p170_p2 = scmp.eq.s32.totalorder %s585_s24, 1  ;;  %p175_p3 = scmp.ne.s32.totalorder %s768_s19, %s764_s18 }
   0x8   : > { %s979_s26 = smov (%p32_p0, %s30_s26), 0  ;;  %p176_p5 = scmp.eq.s32.totalorder %s586_s25, 1 }
   0x9   : > { %p859_p4 = por %p170_p2, %p169_p1  ;;  %s154_s29 = ssub.s32 %s780_s22, %s979_s26 }
   0xa   : > { %p591_p6 = scmp.ge.s32.totalorder %s784_s23, 1  ;;  %p157_p7 = scmp.eq.s32.totalorder %s154_s29, 0 }
   0xb   : > { %p866_p8 = por %p176_p5, %p175_p3  ;;  %p222_p9 = scmp.lt.s32.totalorder %s784_s23, 3 }
   0xc   : > { %s872_s6 = scalar_select %p157_p7, %s772_s20, %s159_s27  }
   0xd   : > { %p223_p10 = pnand %p591_p6, %p222_p9 }
   0xe   : > { %v700_v0 = vld [vmem:[%s966_s1] sm:$0xff] (!%p223_p10)   ;;  %s593_s9 = sshll.u32 (!%p223_p10), %s776_s21, 2  ;;  %v701_v1 = vld [vmem:[%s966_s1 + $0x8] sm:$0xff] (!%p223_p10)   ;;  %vm305_vm0 = vcmask (!%p223_p10), 261120   ;;  %v704_v10 = vld [vmem:[%s968_s3 + $0x10] sm:$0xff] (!%p223_p10)   ;;  %vm367_vm1 = vcmask (!%p223_p10), 523264  }
   0xf   : > { %226 = sbr.rel (%p223_p10) target bundleno = 491 (0x1eb), region = 40  ;;  %p258_p11 = scmp.lt.s32.totalorder (!%p223_p10), %s593_s9, 7  ;;  %623 = vmatprep.subr.bf16.mxu0 (!%p223_p10), %v700_v0  ;;  %v702_v8 = vld [vmem:[%s968_s3] sm:$0xff] (!%p223_p10)   ;;  %v703_v9 = vld [vmem:[%s968_s3 + $0x8] sm:$0xff] (!%p223_p10)   ;;  %v705_v11 = vld [vmem:[%s968_s3 + $0x18] sm:$0xff] (!%p223_p10)  }
  0x10   : > { %624 = vmatpush3.bf16.msra.mxu0 (!%p223_p10), %v700_v0  ;;  %631 = vmatprep.subr.bf16.mxu1 (!%p223_p10), %v702_v8  ;;  %v595_v12 = vld [vmem:[%s967_s2] ss:$0 sm:$0xff] (!%p223_p10)  ;;  %s254_s11 = sand.u32 (!%p223_p10), 1, %s768_s19   ;;  %s612_s17 = sshll.u32 (!%p223_p10), %s776_s21, 9 }
  0x11   : > { %625 = vmatprep.subr.bf16.mxu0 (!%p223_p10), %v701_v1  ;;  %632 = vmatpush3.bf16.msra.mxu1 (!%p223_p10), %v702_v8  ;;  %v600_v29 = vld [vmem:[%s969_s4] ss:$0 sm:$0xff] (!%p223_p10)  ;;  %s914_s27 = scalar_lea.hbm (!%p223_p10), %s970_s5, %s612_s17  ;;  %s919_s21 = scalar_lea.sflag (!%p223_p10), [#allocation4], %s254_s11 }
  0x12   : > { %633 = vmatprep.subr.bf16.mxu1 (!%p223_p10), %v703_v9  ;;  %s786_s7 = smov (!%p223_p10), [#allocation3]  }
  0x13   : > { %s710_s8 = sshll.u32 (!%p223_p10), %s786_s7, 4  ;;  %s711_s8 = int_to_ptr.vmem [resolvable:$false] %s710_s8 }
  0x14   : > { %626 = vmatpush3.bf16.msra.mxu0 (!%p223_p10), %v701_v1 }
  0x15   : > { %634 = vmatpush3.bf16.msra.mxu1 (!%p223_p10), %v703_v9 }
  0x16   : > { %s981_s9 = smov (!%p258_p11, %s593_s9), 7  ;;  %635 = vmatprep.subr.bf16.mxu1 %v704_v10 }
  0x17   : > { %s594_s12 = sshll.u32 %s981_s9, 3  ;;  %s712_s9 = scalar_lea.vmem %s711_s8, 1024 }
  0x18   : > { %s261_s15 = scalar_lea.vmem %s965_s0, %s594_s12  ;;  %s592_s12 = sshll.u32 %s254_s11, 5 }
  0x19   : > { %v276_v2 = vld [vmem:[%s261_s15] sm:$0xff]  ;;  %v277_v3 = vld [vmem:[%s261_s15 + $0x8] sm:$0xff]  ;;  %v278_v4 = vld [vmem:[%s261_s15 + $0x10] sm:$0xff]  ;;  %636 = vmatpush3.bf16.msra.mxu1 %v704_v10 }
  0x1a   : > { %v280_v5 = vpack.c.bf16 %v277_v3, %v276_v2  ;;  %v279_v6 = vld [vmem:[%s261_s15 + $0x18] sm:$0xff]  ;;  %637 = vmatprep.subr.bf16.mxu1 %v705_v11  ;;  %s256_s15 = scalar_lea.vmem [#allocation3], %s592_s12 }
  0x1b   : > { %v281_v7 = vpack.c.bf16 %v279_v6, %v278_v4  ;;  %s486_s16 = sshll.u32 %s256_s15, 4  ;;  %s909_s16 = int_to_ptr.vmem [resolvable:$true] %s486_s16 }
  0x1c   : > { %627 = vmatprep.mubr.msk.bf16.mxu0 %vm305_vm0, %v280_v5  ;;  %s706_s29 = scalar_lea.vmem %s909_s16, 512  ;;  %p713_p1 = scmp.lt.s32.totalorder %s909_s16, %s711_s8 }
  0x1d   : > { %628 = vmatmul.mubr.msk.bf16.vlgmr.msra.gmra.mrb[0].mxu0 %vm305_vm0, %v281_v7  ;;  %638 = vmatpush3.bf16.msra.mxu1 %v705_v11  ;;  %p707_p12 = scmp.ne.s32.totalorder %s909_s16, %s706_s29  ;;  %p714_p2 = scmp.lt.s32.totalorder %s712_s9, %s706_s29 }
  0x1f   : > { %p708_p13 = pnand %p707_p12, %p859_p4  ;;  %p715_p3 = por %p714_p2, %p713_p1 }
  0x21   : > { %p709_p0 = pneg %p708_p13 }
  0x23   : > { %p716_p5 = pnand %p715_p3, %p709_p0 }
  0xf0   : > { %v629_v13 = vpop.f32.mrb[0].mxu0 }
  0xf1   : > { %v355_v14 = vadd.f32 %v629_v13, %v595_v12  ;;  %v346_v15 = vpop.f32.mrb[1].mxu0 }
  0xf2   : > { %v347_v16 = vadd.f32 %v595_v12, %v346_v15  ;;  %v630_v17 = vpop.f32.mrb[2].mxu0 }
  0xf3   : > { %v358_v18 = vadd.f32 %v630_v17, %v595_v12  ;;  %v349_v19 = vpop.f32.mrb[3].mxu0  ;;  %v363_v21 = vmax.f32 %v355_v14, 0.0 }
  0xf4   : > { %v350_v20 = vadd.f32 %v595_v12, %v349_v19  ;;  %v361_v23 = vmax.f32 %v347_v16, 0.0 }
  0xf5   : > { %v364_v22 = vmax.f32 %v358_v18, 0.0 }
  0xf6   : > { %v362_v24 = vmax.f32 %v350_v20, 0.0 }
  0xf7   : > { %v366_v25 = vpack.c.bf16 %v364_v22, %v363_v21 }
  0xf8   : > { %v365_v26 = vpack.c.bf16 %v362_v24, %v361_v23 }
  0xf9   : > { %369 = vst.msk [vmem:[#allocation2 + $0x8] sm:$0xff] %vm367_vm1, %v366_v25 }
  0xfa   : > { %368 = vst.msk [vmem:[#allocation2] sm:$0xff] %vm367_vm1, %v365_v26 }
 0x100   : > { %v371_v28 = vld [vmem:[#allocation2 + $0x8] sm:$0xff] }
 0x101   : > { %v370_v27 = vld [vmem:[#allocation2] sm:$0xff] }
 0x102   : > { %639 = vmatprep.mubr.msk.bf16.mxu1 %vm367_vm1, %v370_v27 }
 0x103   : > { %640 = vmatmul.mubr.msk.bf16.vlgmr.msra.gmra.mrb[0].mxu1 %vm367_vm1, %v371_v28 }
 0x1d6   : > { %v641_v30 = vpop.f32.mrb[0].mxu1 }
 0x1d7   : > { %v461_v31 = vadd.f32 %v641_v30, %v600_v29  ;;  %v452_v32 = vpop.f32.mrb[1].mxu1 }
 0x1d8   : > { %v453_v33 = vadd.f32 %v600_v29, %v452_v32  ;;  %v642_v34 = vpop.f32.mrb[2].mxu1 }
 0x1d9   : > { %469 = vst.msk [vmem:[%s256_s15 + $0x10] sm:$0xff] %vm367_vm1, %v461_v31  ;;  %v464_v35 = vadd.f32 %v642_v34, %v600_v29  ;;  %v455_v36 = vpop.f32.mrb[3].mxu1 }
 0x1da   : > { %467 = vst.msk [vmem:[%s256_s15] sm:$0xff] %vm367_vm1, %v453_v33  ;;  %v456_v37 = vadd.f32 %v600_v29, %v455_v36 }
 0x1db   : > { %470 = vst.msk [vmem:[%s256_s15 + $0x18] sm:$0xff] %vm367_vm1, %v464_v35 }
 0x1dc   : > { %468 = vst.msk [vmem:[%s256_s15 + $0x8] sm:$0xff] %vm367_vm1, %v456_v37 }
 0x1dd   : > { %719 = shalt.err (!%p716_p5)
}
 0x1de   : > { %s720_s10 = scalar_lea.hbm %s914_s27, 512  ;;  %s724_s13 = scalar_lea.hbm %s970_s5, 1024 }
 0x1df   : > { %p721_p6 = scmp.ne.s32.totalorder %s914_s27, %s720_s10  ;;  %p725_p10 = scmp.lt.u32.totalorder %s914_s27, %s970_s5 }
 0x1e0   : > { %p726_p11 = scmp.lt.u32.totalorder %s724_s13, %s720_s10  ;;  %p728_p13 = scmp.lt.u32.totalorder %s720_s10, %s914_s27 }
 0x1e1   : > { %p722_p7 = pnand %p721_p6, %p859_p4 }
 0x1e2   : > { %p727_p12 = por %p726_p11, %p725_p10 }
 0x1e3   : > { %p723_p9 = pneg %p722_p7 }
 0x1e4   : > { %p729_p0 = por %p728_p13, %p727_p12 }
 0x1e6   : > { %p730_p1 = pnand %p729_p0, %p723_p9 }
 0x1e8   : > { %733 = shalt.err (!%p730_p1)
}
 0x1e9   : > { %s787_s17 = smov 128   ;;  %s788_s24 = smov 8  }
 0x1ea   : > { %643 = dma.vmem_to_hbm [thread:$0]  (%p859_p4), %s909_s16, 512, %s914_s27, %s919_s21, %s787_s17, %s787_s17, %s788_s24  }
 0x1eb PF: > { %p649_p2 = scmp.ge.s32.totalorder %s784_s23, 2  ;;  %s501_s25 = sand.u32 1, %s764_s18  }
 0x1ec   : > { %s502_s29 = scalar_lea.sflag [#allocation4], %s501_s25 }
 0x1ed   : > { %p646_p3 = pnand %p649_p2, %p866_p8 }
 0x1ef   : > { %759 = dma.done.wait (!%p646_p3), %s502_s29, 512  }
 0x1f0   : > { %761 = vsyncadd (!%p646_p3), %s502_s29, 4294966784  ;;  %s18_s23 = sadd.s32 1, %s784_s23   ;;  %s973_s18 = smov %s768_s19 }
 0x1f1   : > { %p15_p5 = scmp.ge.s32.totalorder %s18_s23, 4   ;;  %s974_s19 = smov %s772_s20 }
 0x1f2   : > { %s975_s20 = smov %s872_s6  ;;  %s976_s21 = smov %s780_s22 }
 0x1f3   : > { %s977_s22 = smov %s979_s26  ;;  %17 = sbr.rel (!%p15_p5) target bundleno = 4 (0x4), region = 85 }
 0x1fa   :  { %507 = vsyncpa [#allocation4], 1 }
 0x1fb   :  { %509 = vsyncpa [#allocation4 + $0x1], 1 }

// kernel: tpu_custom_call.1
= control target key start
LH: loop header
LB: loop body
LE: loop exit
PB: predicated region body
PF: predicated region fallthrough
CT: control target
= control target key end

     0   :  { %10 = vsyncpa [#allocation4], 0  ;;  %s965_s0 = inlined_call_operand.vmem [shape: f32[64,32], index: 0, kind: input, shape index: {}]   ;;  %s966_s1 = inlined_call_operand.vmem [shape: bf16[32,64], index: 1, kind: input, shape index: {}]   ;;  %s967_s2 = inlined_call_operand.vmem [shape: f32[1,64], index: 2, kind: input, shape index: {}]   ;;  %s968_s3 = inlined_call_operand.vmem [shape: bf16[64,64], index: 3, kind: input, shape index: {}]   ;;  %s969_s4 = inlined_call_operand.vmem [shape: f32[1,64], index: 4, kind: input, shape index: {}]   ;;  %s970_s5 = inlined_call_operand.hbm [shape: f32[64,64], index: 5, kind: output, shape index: {}]  }
   0x1   :  { %12 = vsyncpa [#allocation4 + $0x1], 0  ;;  %s819_s18 = smov 0   ;;  %s821_s19 = smov 0  }
   0x2   :  { %s823_s20 = smov 0   ;;  %s825_s21 = smov 0  }
   0x3   :  { %s827_s22 = smov 0   ;;  %s829_s23 = smov 0  }
   0x4 LB: > { %s585_s24 = sadd.s32 4294967295, %s784_s23   ;;  %s586_s25 = sadd.s32 4294967294, %s784_s23   ;;  %s784_s23 = sphi %s829_s23, %s18_s23   ;;  %s780_s22 = sphi %s827_s22, %s977_s22   ;;  %s776_s21 = sphi %s825_s21, %s976_s21   ;;  %s772_s20 = sphi %s823_s20, %s975_s20   ;;  %s768_s19 = sphi %s821_s19, %s974_s19   ;;  %s764_s18 = sphi %s819_s18, %s973_s18  }
   0x5   : > { %s30_s26 = sadd.s32 1, %s780_s22  ;;  %s159_s27 = sadd.s32 1, %s772_s20 }
   0x6   : > { %p32_p0 = scmp.ge.s32.totalorder %s30_s26, 2  ;;  %p169_p1 = scmp.ne.s32.totalorder %s772_s20, %s768_s19 }
   0x7   : > { %p170_p2 = scmp.eq.s32.totalorder %s585_s24, 1  ;;  %p175_p3 = scmp.ne.s32.totalorder %s768_s19, %s764_s18 }
   0x8   : > { %s979_s26 = smov (%p32_p0, %s30_s26), 0  ;;  %p176_p5 = scmp.eq.s32.totalorder %s586_s25, 1 }
   0x9   : > { %p859_p4 = por %p170_p2, %p169_p1  ;;  %s154_s29 = ssub.s32 %s780_s22, %s979_s26 }
   0xa   : > { %p591_p6 = scmp.ge.s32.totalorder %s784_s23, 1  ;;  %p157_p7 = scmp.eq.s32.totalorder %s154_s29, 0 }
   0xb   : > { %p866_p8 = por %p176_p5, %p175_p3  ;;  %p222_p9 = scmp.lt.s32.totalorder %s784_s23, 3 }
   0xc   : > { %s872_s6 = scalar_select %p157_p7, %s772_s20, %s159_s27  }
   0xd   : > { %p223_p10 = pnand %p591_p6, %p222_p9 }
   0xe   : > { %v700_v0 = vld [vmem:[%s966_s1] sm:$0xff] (!%p223_p10)   ;;  %s593_s9 = sshll.u32 (!%p223_p10), %s776_s21, 2  ;;  %v701_v1 = vld [vmem:[%s966_s1 + $0x8] sm:$0xff] (!%p223_p10)   ;;  %vm305_vm0 = vcmask (!%p223_p10), 261120   ;;  %v704_v10 = vld [vmem:[%s968_s3 + $0x10] sm:$0xff] (!%p223_p10)   ;;  %vm367_vm1 = vcmask (!%p223_p10), 523264  }
   0xf   : > { %226 = sbr.rel (%p223_p10) target bundleno = 491 (0x1eb), region = 40  ;;  %p258_p11 = scmp.lt.s32.totalorder (!%p223_p10), %s593_s9, 7  ;;  %623 = vmatprep.subr.bf16.mxu0 (!%p223_p10), %v700_v0  ;;  %v702_v8 = vld [vmem:[%s968_s3] sm:$0xff] (!%p223_p10)   ;;  %v703_v9 = vld [vmem:[%s968_s3 + $0x8] sm:$0xff] (!%p223_p10)   ;;  %v705_v11 = vld [vmem:[%s968_s3 + $0x18] sm:$0xff] (!%p223_p10)  }
  0x10   : > { %624 = vmatpush3.bf16.msra.mxu0 (!%p223_p10), %v700_v0  ;;  %631 = vmatprep.subr.bf16.mxu1 (!%p223_p10), %v702_v8  ;;  %v595_v12 = vld [vmem:[%s967_s2] ss:$0 sm:$0xff] (!%p223_p10)  ;;  %s254_s11 = sand.u32 (!%p223_p10), 1, %s768_s19   ;;  %s612_s17 = sshll.u32 (!%p223_p10), %s776_s21, 9 }
  0x11   : > { %625 = vmatprep.subr.bf16.mxu0 (!%p223_p10), %v701_v1  ;;  %632 = vmatpush3.bf16.msra.mxu1 (!%p223_p10), %v702_v8  ;;  %v600_v29 = vld [vmem:[%s969_s4] ss:$0 sm:$0xff] (!%p223_p10)  ;;  %s914_s27 = scalar_lea.hbm (!%p223_p10), %s970_s5, %s612_s17  ;;  %s919_s21 = scalar_lea.sflag (!%p223_p10), [#allocation4], %s254_s11 }
  0x12   : > { %633 = vmatprep.subr.bf16.mxu1 (!%p223_p10), %v703_v9  ;;  %s786_s7 = smov (!%p223_p10), [#allocation3]  }
  0x13   : > { %s710_s8 = sshll.u32 (!%p223_p10), %s786_s7, 4  ;;  %s711_s8 = int_to_ptr.vmem [resolvable:$false] %s710_s8 }
  0x14   : > { %626 = vmatpush3.bf16.msra.mxu0 (!%p223_p10), %v701_v1 }
  0x15   : > { %634 = vmatpush3.bf16.msra.mxu1 (!%p223_p10), %v703_v9 }
  0x16   : > { %s981_s9 = smov (!%p258_p11, %s593_s9), 7  ;;  %635 = vmatprep.subr.bf16.mxu1 %v704_v10 }
  0x17   : > { %s594_s12 = sshll.u32 %s981_s9, 3  ;;  %s712_s9 = scalar_lea.vmem %s711_s8, 1024 }
  0x18   : > { %s261_s15 = scalar_lea.vmem %s965_s0, %s594_s12  ;;  %s592_s12 = sshll.u32 %s254_s11, 5 }
  0x19   : > { %v276_v2 = vld [vmem:[%s261_s15] sm:$0xff]  ;;  %v277_v3 = vld [vmem:[%s261_s15 + $0x8] sm:$0xff]  ;;  %v278_v4 = vld [vmem:[%s261_s15 + $0x10] sm:$0xff]  ;;  %636 = vmatpush3.bf16.msra.mxu1 %v704_v10 }
  0x1a   : > { %v280_v5 = vpack.c.bf16 %v277_v3, %v276_v2  ;;  %v279_v6 = vld [vmem:[%s261_s15 + $0x18] sm:$0xff]  ;;  %637 = vmatprep.subr.bf16.mxu1 %v705_v11  ;;  %s256_s15 = scalar_lea.vmem [#allocation3], %s592_s12 }
  0x1b   : > { %v281_v7 = vpack.c.bf16 %v279_v6, %v278_v4  ;;  %s486_s16 = sshll.u32 %s256_s15, 4  ;;  %s909_s16 = int_to_ptr.vmem [resolvable:$true] %s486_s16 }
  0x1c   : > { %627 = vmatprep.mubr.msk.bf16.mxu0 %vm305_vm0, %v280_v5  ;;  %s706_s29 = scalar_lea.vmem %s909_s16, 512  ;;  %p713_p1 = scmp.lt.s32.totalorder %s909_s16, %s711_s8 }
  0x1d   : > { %628 = vmatmul.mubr.msk.bf16.vlgmr.msra.gmra.mrb[0].mxu0 %vm305_vm0, %v281_v7  ;;  %638 = vmatpush3.bf16.msra.mxu1 %v705_v11  ;;  %p707_p12 = scmp.ne.s32.totalorder %s909_s16, %s706_s29  ;;  %p714_p2 = scmp.lt.s32.totalorder %s712_s9, %s706_s29 }
  0x1f   : > { %p708_p13 = pnand %p707_p12, %p859_p4  ;;  %p715_p3 = por %p714_p2, %p713_p1 }
  0x21   : > { %p709_p0 = pneg %p708_p13 }
  0x23   : > { %p716_p5 = pnand %p715_p3, %p709_p0 }
  0xf0   : > { %v629_v13 = vpop.f32.mrb[0].mxu0 }
  0xf1   : > { %v355_v14 = vadd.f32 %v629_v13, %v595_v12  ;;  %v346_v15 = vpop.f32.mrb[1].mxu0 }
  0xf2   : > { %v347_v16 = vadd.f32 %v595_v12, %v346_v15  ;;  %v630_v17 = vpop.f32.mrb[2].mxu0 }
  0xf3   : > { %v358_v18 = vadd.f32 %v630_v17, %v595_v12  ;;  %v349_v19 = vpop.f32.mrb[3].mxu0  ;;  %v363_v21 = vmax.f32 %v355_v14, 0.0 }
  0xf4   : > { %v350_v20 = vadd.f32 %v595_v12, %v349_v19  ;;  %v361_v23 = vmax.f32 %v347_v16, 0.0 }
  0xf5   : > { %v364_v22 = vmax.f32 %v358_v18, 0.0 }
  0xf6   : > { %v362_v24 = vmax.f32 %v350_v20, 0.0 }
  0xf7   : > { %v366_v25 = vpack.c.bf16 %v364_v22, %v363_v21 }
  0xf8   : > { %v365_v26 = vpack.c.bf16 %v362_v24, %v361_v23 }
  0xf9   : > { %369 = vst.msk [vmem:[#allocation2 + $0x8] sm:$0xff] %vm367_vm1, %v366_v25 }
  0xfa   : > { %368 = vst.msk [vmem:[#allocation2] sm:$0xff] %vm367_vm1, %v365_v26 }
 0x100   : > { %v371_v28 = vld [vmem:[#allocation2 + $0x8] sm:$0xff] }
 0x101   : > { %v370_v27 = vld [vmem:[#allocation2] sm:$0xff] }
 0x102   : > { %639 = vmatprep.mubr.msk.bf16.mxu1 %vm367_vm1, %v370_v27 }
 0x103   : > { %640 = vmatmul.mubr.msk.bf16.vlgmr.msra.gmra.mrb[0].mxu1 %vm367_vm1, %v371_v28 }
 0x1d6   : > { %v641_v30 = vpop.f32.mrb[0].mxu1 }
 0x1d7   : > { %v461_v31 = vadd.f32 %v641_v30, %v600_v29  ;;  %v452_v32 = vpop.f32.mrb[1].mxu1 }
 0x1d8   : > { %v453_v33 = vadd.f32 %v600_v29, %v452_v32  ;;  %v642_v34 = vpop.f32.mrb[2].mxu1 }
 0x1d9   : > { %469 = vst.msk [vmem:[%s256_s15 + $0x10] sm:$0xff] %vm367_vm1, %v461_v31  ;;  %v464_v35 = vadd.f32 %v642_v34, %v600_v29  ;;  %v455_v36 = vpop.f32.mrb[3].mxu1 }
 0x1da   : > { %467 = vst.msk [vmem:[%s256_s15] sm:$0xff] %vm367_vm1, %v453_v33  ;;  %v456_v37 = vadd.f32 %v600_v29, %v455_v36 }
 0x1db   : > { %470 = vst.msk [vmem:[%s256_s15 + $0x18] sm:$0xff] %vm367_vm1, %v464_v35 }
 0x1dc   : > { %468 = vst.msk [vmem:[%s256_s15 + $0x8] sm:$0xff] %vm367_vm1, %v456_v37 }
 0x1dd   : > { %719 = shalt.err (!%p716_p5)
}
 0x1de   : > { %s720_s10 = scalar_lea.hbm %s914_s27, 512  ;;  %s724_s13 = scalar_lea.hbm %s970_s5, 1024 }
 0x1df   : > { %p721_p6 = scmp.ne.s32.totalorder %s914_s27, %s720_s10  ;;  %p725_p10 = scmp.lt.u32.totalorder %s914_s27, %s970_s5 }
 0x1e0   : > { %p726_p11 = scmp.lt.u32.totalorder %s724_s13, %s720_s10  ;;  %p728_p13 = scmp.lt.u32.totalorder %s720_s10, %s914_s27 }
 0x1e1   : > { %p722_p7 = pnand %p721_p6, %p859_p4 }
 0x1e2   : > { %p727_p12 = por %p726_p11, %p725_p10 }
 0x1e3   : > { %p723_p9 = pneg %p722_p7 }
 0x1e4   : > { %p729_p0 = por %p728_p13, %p727_p12 }
 0x1e6   : > { %p730_p1 = pnand %p729_p0, %p723_p9 }
 0x1e8   : > { %733 = shalt.err (!%p730_p1)
}
 0x1e9   : > { %s787_s17 = smov 128   ;;  %s788_s24 = smov 8  }
 0x1ea   : > { %643 = dma.vmem_to_hbm [thread:$0]  (%p859_p4), %s909_s16, 512, %s914_s27, %s919_s21, %s787_s17, %s787_s17, %s788_s24  }
 0x1eb PF: > { %p649_p2 = scmp.ge.s32.totalorder %s784_s23, 2  ;;  %s501_s25 = sand.u32 1, %s764_s18  }
 0x1ec   : > { %s502_s29 = scalar_lea.sflag [#allocation4], %s501_s25 }
 0x1ed   : > { %p646_p3 = pnand %p649_p2, %p866_p8 }
 0x1ef   : > { %759 = dma.done.wait (!%p646_p3), %s502_s29, 512  }
 0x1f0   : > { %761 = vsyncadd (!%p646_p3), %s502_s29, 4294966784  ;;  %s18_s23 = sadd.s32 1, %s784_s23   ;;  %s973_s18 = smov %s768_s19 }
 0x1f1   : > { %p15_p5 = scmp.ge.s32.totalorder %s18_s23, 4   ;;  %s974_s19 = smov %s772_s20 }
 0x1f2   : > { %s975_s20 = smov %s872_s6  ;;  %s976_s21 = smov %s780_s22 }
 0x1f3   : > { %s977_s22 = smov %s979_s26  ;;  %17 = sbr.rel (!%p15_p5) target bundleno = 4 (0x4), region = 85 }
 0x1fa   :  { %507 = vsyncpa [#allocation4], 1 }
 0x1fb   :  { %509 = vsyncpa [#allocation4 + $0x1], 1 }

</bundles_post_ra>
